<compile_context>
chip_gen: v7x
topology: tpu7x:2x2x1
jax: 0.10.0
libtpu: 0.0.40
codegen_flags: <defaults>
</compile_context>

<pallas_src>
import jax
import jax.numpy as jnp
from jax import lax
from jax.experimental import pallas as pl
from jax.experimental.pallas import tpu as pltpu

NUM_STEPS = 3
DT = 1.0
BN_EPS = 1e-5

# Contract Y's dim 1 with K's dim 1  ->  Y @ K^T, without materializing K^T.
_DN_TRANS_B = (((1,), (1,)), ((), ()))


def parabolic_kernel(y_ref, k_ref, gamma_ref, beta_ref, out_ref):
    B, F = y_ref.shape

    Y = y_ref[...].astype(jnp.float32)          # (B, F) f32 state
    K = k_ref[...]                              # (F, F) bf16 — single resident copy

    gamma = gamma_ref[...].astype(jnp.float32)  # (1, F)
    beta = beta_ref[...].astype(jnp.float32)    # (1, F)

    # Forward-Euler integration; NUM_STEPS is small & static -> unrolled.
    for _ in range(NUM_STEPS):
        # KY = Y @ K^T  — bf16 MXU operands, f32 accumulation, transposed-RHS contraction.
        KY = lax.dot_general(Y.astype(jnp.bfloat16), K, _DN_TRANS_B,
                             preferred_element_type=jnp.float32)

        # Training-mode BatchNorm1d: per-feature batch stats, biased variance (f32),
        # affine fused into the normalization scale (all (1,F) row-broadcasts).
        mu = jnp.mean(KY, axis=0, keepdims=True)
        xc = KY - mu
        var = jnp.mean(xc * xc, axis=0, keepdims=True)
        scale = gamma * lax.rsqrt(var + BN_EPS)           # (1, F)
        sigma = jnp.maximum(xc * scale + beta, 0.0)       # ReLU

        # F_sym = -(sigma @ K);  Y <- Y + dt * F_sym  (single subtract, dt folded).
        upd = jnp.dot(sigma.astype(jnp.bfloat16), K, preferred_element_type=jnp.float32)
        if DT == 1.0:
            Y = Y - upd
        else:
            Y = Y - DT * upd

    out_ref[...] = Y.astype(out_ref.dtype)


def _vmem_capacity_bytes():
    """Trace-time VMEM capacity query with a conservative fallback (v7x = 64 MiB/TC)."""
    try:
        info = pltpu.get_tpu_info()
        cap = getattr(info, "vmem_capacity_bytes", None)
        if cap:
            return int(cap)
    except Exception:
        pass
    return 64 << 20


def parabolic_block(Y_nchw, params):
    """Y_nchw: (B, C, H, W) float32. params: dict of K (F,F) f32, gamma (1,F), beta (1,F)."""
    B, C, H, W = Y_nchw.shape
    F = C * H * W
    Y_flat = Y_nchw.reshape(B, F)

    # bf16 MXU weight (halves weight DMA bytes & VMEM residency); single copy, no K^T.
    K_bf16 = params["K"].astype(jnp.bfloat16)

    # Generation-aware VMEM budget derived from the real footprint.
    footprint = (F * F * 2            # K in bf16 (single resident copy)
                 + 6 * B * F * 4      # Y in/out + f32 intermediates (KY, xc, sigma, upd)
                 + 4 * F * 4)         # gamma, beta, mu/var/scale rows
    headroom = 4 << 20                # Mosaic internal scratch
    vmem_budget = int(0.75 * _vmem_capacity_bytes())
    if footprint + headroom > vmem_budget:
        # TODO(synk): fall back to the feature-tiled streaming grid described above.
        raise NotImplementedError(
            f"grid-less ParabolicBlock footprint {footprint} B exceeds VMEM budget "
            f"{vmem_budget} B; feature-tiled path not implemented yet")
    vmem_limit = int(min(max(footprint + headroom, 8 << 20), vmem_budget))

    # Advisory cost for XLA's scheduler: 2 matmuls of 2*B*F*F flops per step;
    # traffic = K (bf16) + Y read + Y write + affine params.
    cost = pl.CostEstimate(
        flops=NUM_STEPS * 2 * 2 * B * F * F,
        transcendentals=NUM_STEPS * F,                   # rsqrt per feature per step
        bytes_accessed=F * F * 2 + 2 * B * F * 4 + 2 * F * 4,
    )

    vmem_spec = pl.BlockSpec(memory_space=pltpu.MemorySpace.VMEM)
    out_flat = pl.pallas_call(
        parabolic_kernel,
        out_shape=jax.ShapeDtypeStruct((B, F), Y_flat.dtype),
        in_specs=[vmem_spec] * 4,
        out_specs=vmem_spec,
        input_output_aliases={0: 0},                     # Y_flat -> out (same shape/dtype)
        cost_estimate=cost,
        compiler_params=pltpu.CompilerParams(vmem_limit_bytes=vmem_limit),
    )(Y_flat, K_bf16, params["gamma"], params["beta"])
    return out_flat.reshape(B, C, H, W)


def init_params(key, feature_dim):
    """Deterministic synthetic parameters matching SymmetricLayer.__init__ shapes."""
    kK, kg, kb = jax.random.split(key, 3)
    eye = jnp.eye(feature_dim, dtype=jnp.float32)
    K = eye + 0.01 * jax.random.normal(kK, (feature_dim, feature_dim), jnp.float32)
    # BatchNorm affine params stored as (1, F) rows for lane-friendly broadcast.
    gamma = 1.0 + 0.1 * jax.random.normal(kg, (1, feature_dim), jnp.float32)
    beta = 0.1 * jax.random.normal(kb, (1, feature_dim), jnp.float32)
    return dict(K=K, gamma=gamma, beta=beta)


def reference_forward(Y_nchw, params):
    """Pure-JAX reference mirroring the PyTorch module (training-mode BatchNorm).

    Uses the same matmul precision policy as the kernel (bf16 MXU operands,
    f32 accumulation, f32 BN math) so the comparison isolates kernel correctness.
    """
    B, C, H, W = Y_nchw.shape
    F = C * H * W
    K = params["K"].astype(jnp.bfloat16)
    gamma, beta = params["gamma"], params["beta"]

    Y = Y_nchw.reshape(B, F).astype(jnp.float32)
    for _ in range(NUM_STEPS):
        KY = jnp.dot(Y.astype(jnp.bfloat16), K.T, preferred_element_type=jnp.float32)
        mu = jnp.mean(KY, axis=0, keepdims=True)
        var = jnp.mean((KY - mu) ** 2, axis=0, keepdims=True)   # biased var (PyTorch BN)
        xhat = (KY - mu) / jnp.sqrt(var + BN_EPS)
        sigma = jnp.maximum(xhat * gamma + beta, 0.0)
        Y = Y - DT * jnp.dot(sigma.astype(jnp.bfloat16), K, preferred_element_type=jnp.float32)
    return Y.reshape(B, C, H, W)


if __name__ == "__main__":
    key = jax.random.PRNGKey(0)
    k_in, k_par = jax.random.split(key)

    B, C, H, W = 2, 4, 8, 8          # feature_dim = C*H*W = 256 (lane-aligned)
    Y = jax.random.normal(k_in, (B, C, H, W), jnp.float32)
    params = init_params(k_par, C * H * W)

    ref = reference_forward(Y, params)

    out = parabolic_block(Y, params)
    out = jax.block_until_ready(out)

    assert out.shape == (B, C, H, W)
    assert jnp.allclose(out, ref, atol=5e-3, rtol=5e-3), "mismatch vs pure-JAX reference"

    print("KERNEL_OK")
</pallas_src>

<mosaic_0001>
module attributes {stable_mosaic.version = 11 : i64} {
  func.func @parabolic_kernel(%arg0: memref<2x256xf32, #tpu.memory_space<vmem>>, %arg1: memref<256x256xbf16, #tpu.memory_space<vmem>>, %arg2: memref<1x256xf32, #tpu.memory_space<vmem>>, %arg3: memref<1x256xf32, #tpu.memory_space<vmem>>, %arg4: memref<2x256xf32, #tpu.memory_space<vmem>>) attributes {dimension_semantics = [], scalar_prefetch = 0 : i64, scratch_operands = 0 : i64, tpu.core_type = #tpu.core_type<tc>} {
    %c0 = arith.constant 0 : index
    %c0_0 = arith.constant 0 : index
    %0 = vector.load %arg0[%c0, %c0_0] : memref<2x256xf32, #tpu.memory_space<vmem>>, vector<2x256xf32>
    %c0_1 = arith.constant 0 : index
    %c0_2 = arith.constant 0 : index
    %1 = vector.load %arg1[%c0_1, %c0_2] : memref<256x256xbf16, #tpu.memory_space<vmem>>, vector<256x256xbf16>
    %c0_3 = arith.constant 0 : index
    %c0_4 = arith.constant 0 : index
    %2 = vector.load %arg2[%c0_3, %c0_4] : memref<1x256xf32, #tpu.memory_space<vmem>>, vector<1x256xf32>
    %c0_5 = arith.constant 0 : index
    %c0_6 = arith.constant 0 : index
    %3 = vector.load %arg3[%c0_5, %c0_6] : memref<1x256xf32, #tpu.memory_space<vmem>>, vector<1x256xf32>
    %4 = arith.truncf %0 : vector<2x256xf32> to vector<2x256xbf16>
    %cst = arith.constant dense<0.000000e+00> : vector<2x256xf32>
    %5 = tpu.matmul %4, %1, %cst {dimension_numbers = #tpu.dot_dimension_numbers<[1], [1], [0], [0], [0, 0, 1, 0], [], []>} : vector<2x256xbf16>, vector<256x256xbf16>, vector<2x256xf32> -> vector<2x256xf32>
    %cst_7 = arith.constant dense<0.000000e+00> : vector<256xf32>
    %6 = vector.multi_reduction <add>, %5, %cst_7 [0] : vector<2x256xf32> to vector<256xf32>
    %7 = vector.shape_cast %6 : vector<256xf32> to vector<1x256xf32>
    %cst_8 = arith.constant 2.000000e+00 : f32
    %8 = vector.broadcast %cst_8 : f32 to vector<1x256xf32>
    %9 = arith.divf %7, %8 : vector<1x256xf32>
    %10 = vector.broadcast %9 : vector<1x256xf32> to vector<2x256xf32>
    %11 = arith.subf %5, %10 : vector<2x256xf32>
    %12 = arith.mulf %11, %11 : vector<2x256xf32>
    %cst_9 = arith.constant dense<0.000000e+00> : vector<256xf32>
    %13 = vector.multi_reduction <add>, %12, %cst_9 [0] : vector<2x256xf32> to vector<256xf32>
    %14 = vector.shape_cast %13 : vector<256xf32> to vector<1x256xf32>
    %cst_10 = arith.constant 2.000000e+00 : f32
    %15 = vector.broadcast %cst_10 : f32 to vector<1x256xf32>
    %16 = arith.divf %14, %15 : vector<1x256xf32>
    %cst_11 = arith.constant 9.99999974E-6 : f32
    %17 = vector.broadcast %cst_11 : f32 to vector<1x256xf32>
    %18 = arith.addf %16, %17 : vector<1x256xf32>
    %19 = math.rsqrt %18 : vector<1x256xf32>
    %20 = arith.mulf %2, %19 : vector<1x256xf32>
    %21 = vector.broadcast %20 : vector<1x256xf32> to vector<2x256xf32>
    %22 = arith.mulf %11, %21 : vector<2x256xf32>
    %23 = vector.broadcast %3 : vector<1x256xf32> to vector<2x256xf32>
    %24 = arith.addf %22, %23 : vector<2x256xf32>
    %cst_12 = arith.constant 0.000000e+00 : f32
    %25 = vector.broadcast %cst_12 : f32 to vector<2x256xf32>
    %26 = arith.maximumf %24, %25 : vector<2x256xf32>
    %27 = arith.truncf %26 : vector<2x256xf32> to vector<2x256xbf16>
    %cst_13 = arith.constant dense<0.000000e+00> : vector<2x256xf32>
    %28 = tpu.matmul %27, %1, %cst_13 {dimension_numbers = #tpu.dot_dimension_numbers<[1], [0], [0], [1], [0, 0, 1, 1], [], []>} : vector<2x256xbf16>, vector<256x256xbf16>, vector<2x256xf32> -> vector<2x256xf32>
    %29 = arith.subf %0, %28 : vector<2x256xf32>
    %30 = arith.truncf %29 : vector<2x256xf32> to vector<2x256xbf16>
    %cst_14 = arith.constant dense<0.000000e+00> : vector<2x256xf32>
    %31 = tpu.matmul %30, %1, %cst_14 {dimension_numbers = #tpu.dot_dimension_numbers<[1], [1], [0], [0], [0, 0, 1, 0], [], []>} : vector<2x256xbf16>, vector<256x256xbf16>, vector<2x256xf32> -> vector<2x256xf32>
    %cst_15 = arith.constant dense<0.000000e+00> : vector<256xf32>
    %32 = vector.multi_reduction <add>, %31, %cst_15 [0] : vector<2x256xf32> to vector<256xf32>
    %33 = vector.shape_cast %32 : vector<256xf32> to vector<1x256xf32>
    %cst_16 = arith.constant 2.000000e+00 : f32
    %34 = vector.broadcast %cst_16 : f32 to vector<1x256xf32>
    %35 = arith.divf %33, %34 : vector<1x256xf32>
    %36 = vector.broadcast %35 : vector<1x256xf32> to vector<2x256xf32>
    %37 = arith.subf %31, %36 : vector<2x256xf32>
    %38 = arith.mulf %37, %37 : vector<2x256xf32>
    %cst_17 = arith.constant dense<0.000000e+00> : vector<256xf32>
    %39 = vector.multi_reduction <add>, %38, %cst_17 [0] : vector<2x256xf32> to vector<256xf32>
    %40 = vector.shape_cast %39 : vector<256xf32> to vector<1x256xf32>
    %cst_18 = arith.constant 2.000000e+00 : f32
    %41 = vector.broadcast %cst_18 : f32 to vector<1x256xf32>
    %42 = arith.divf %40, %41 : vector<1x256xf32>
    %cst_19 = arith.constant 9.99999974E-6 : f32
    %43 = vector.broadcast %cst_19 : f32 to vector<1x256xf32>
    %44 = arith.addf %42, %43 : vector<1x256xf32>
    %45 = math.rsqrt %44 : vector<1x256xf32>
    %46 = arith.mulf %2, %45 : vector<1x256xf32>
    %47 = vector.broadcast %46 : vector<1x256xf32> to vector<2x256xf32>
    %48 = arith.mulf %37, %47 : vector<2x256xf32>
    %49 = vector.broadcast %3 : vector<1x256xf32> to vector<2x256xf32>
    %50 = arith.addf %48, %49 : vector<2x256xf32>
    %cst_20 = arith.constant 0.000000e+00 : f32
    %51 = vector.broadcast %cst_20 : f32 to vector<2x256xf32>
    %52 = arith.maximumf %50, %51 : vector<2x256xf32>
    %53 = arith.truncf %52 : vector<2x256xf32> to vector<2x256xbf16>
    %cst_21 = arith.constant dense<0.000000e+00> : vector<2x256xf32>
    %54 = tpu.matmul %53, %1, %cst_21 {dimension_numbers = #tpu.dot_dimension_numbers<[1], [0], [0], [1], [0, 0, 1, 1], [], []>} : vector<2x256xbf16>, vector<256x256xbf16>, vector<2x256xf32> -> vector<2x256xf32>
    %55 = arith.subf %29, %54 : vector<2x256xf32>
    %56 = arith.truncf %55 : vector<2x256xf32> to vector<2x256xbf16>
    %cst_22 = arith.constant dense<0.000000e+00> : vector<2x256xf32>
    %57 = tpu.matmul %56, %1, %cst_22 {dimension_numbers = #tpu.dot_dimension_numbers<[1], [1], [0], [0], [0, 0, 1, 0], [], []>} : vector<2x256xbf16>, vector<256x256xbf16>, vector<2x256xf32> -> vector<2x256xf32>
    %cst_23 = arith.constant dense<0.000000e+00> : vector<256xf32>
    %58 = vector.multi_reduction <add>, %57, %cst_23 [0] : vector<2x256xf32> to vector<256xf32>
    %59 = vector.shape_cast %58 : vector<256xf32> to vector<1x256xf32>
    %cst_24 = arith.constant 2.000000e+00 : f32
    %60 = vector.broadcast %cst_24 : f32 to vector<1x256xf32>
    %61 = arith.divf %59, %60 : vector<1x256xf32>
    %62 = vector.broadcast %61 : vector<1x256xf32> to vector<2x256xf32>
    %63 = arith.subf %57, %62 : vector<2x256xf32>
    %64 = arith.mulf %63, %63 : vector<2x256xf32>
    %cst_25 = arith.constant dense<0.000000e+00> : vector<256xf32>
    %65 = vector.multi_reduction <add>, %64, %cst_25 [0] : vector<2x256xf32> to vector<256xf32>
    %66 = vector.shape_cast %65 : vector<256xf32> to vector<1x256xf32>
    %cst_26 = arith.constant 2.000000e+00 : f32
    %67 = vector.broadcast %cst_26 : f32 to vector<1x256xf32>
    %68 = arith.divf %66, %67 : vector<1x256xf32>
    %cst_27 = arith.constant 9.99999974E-6 : f32
    %69 = vector.broadcast %cst_27 : f32 to vector<1x256xf32>
    %70 = arith.addf %68, %69 : vector<1x256xf32>
    %71 = math.rsqrt %70 : vector<1x256xf32>
    %72 = arith.mulf %2, %71 : vector<1x256xf32>
    %73 = vector.broadcast %72 : vector<1x256xf32> to vector<2x256xf32>
    %74 = arith.mulf %63, %73 : vector<2x256xf32>
    %75 = vector.broadcast %3 : vector<1x256xf32> to vector<2x256xf32>
    %76 = arith.addf %74, %75 : vector<2x256xf32>
    %cst_28 = arith.constant 0.000000e+00 : f32
    %77 = vector.broadcast %cst_28 : f32 to vector<2x256xf32>
    %78 = arith.maximumf %76, %77 : vector<2x256xf32>
    %79 = arith.truncf %78 : vector<2x256xf32> to vector<2x256xbf16>
    %cst_29 = arith.constant dense<0.000000e+00> : vector<2x256xf32>
    %80 = tpu.matmul %79, %1, %cst_29 {dimension_numbers = #tpu.dot_dimension_numbers<[1], [0], [0], [1], [0, 0, 1, 1], [], []>} : vector<2x256xbf16>, vector<256x256xbf16>, vector<2x256xf32> -> vector<2x256xf32>
    %81 = arith.subf %55, %80 : vector<2x256xf32>
    %c0_30 = arith.constant 0 : index
    %c0_31 = arith.constant 0 : index
    %82 = vector.load %arg4[%c0_30, %c0_31] : memref<2x256xf32, #tpu.memory_space<vmem>>, vector<2x256xf32>
    tpu.vector_store %arg4[%c0_30, %c0_31], %81 {strides = array<i32>} : memref<2x256xf32, #tpu.memory_space<vmem>>, vector<2x256xf32>,
    return
  }
}

</mosaic_0001>

<bundles_post_ra>
// kernel: tpu_custom_call.1
= control target key start
LH: loop header
LB: loop body
LE: loop exit
PB: predicated region body
PF: predicated region fallthrough
CT: control target
= control target key end

     0   :  { %9 = vsyncpa [#allocation3], 0  ;;  %s1411_s0 = inlined_call_operand.hbm [shape: f32[2,256], index: 0, kind: input, shape index: {}, may-alias: {0,4}]   ;;  %s1412_s1 = inlined_call_operand.hbm [shape: bf16[256,256], index: 1, kind: input, shape index: {}]   ;;  %s1413_s2 = inlined_call_operand.vmem [shape: f32[1,256], index: 2, kind: input, shape index: {}]   ;;  %s1414_s3 = inlined_call_operand.vmem [shape: f32[1,256], index: 3, kind: input, shape index: {}]   ;;  %s1415_s4 = inlined_call_operand.hbm [shape: f32[2,256], index: 4, kind: output, shape index: {}, may-alias: {0,4}]  }
   0x1   :  { %10 = vsyncpa [#allocation6], 0 }
   0x2   :  { %11 = vsyncpa [#allocation4], 0  ;;  %s995_s15 = smov [#allocation2]   ;;  %s996_s17 = smov [#allocation5]  }
   0x3   :  { %s18_s16 = sshll.u32 %s995_s15, 4  ;;  %s27_s18 = sshll.u32 %s996_s17, 4  ;;  %s19_s16 = int_to_ptr.vmem [resolvable:$true] %s18_s16  ;;  %s1027_s18 = int_to_ptr.vmem [resolvable:$true] %s27_s18 }
   0x4   :  { %s923_s21 = scalar_lea.hbm %s1411_s0, 64 }
   0x5   :  { %p924_p0 = scmp.ne.s32.totalorder %s1411_s0, %s923_s21  ;;  %p927_p1 = scmp.lt.u32.totalorder %s923_s21, %s1411_s0 }
   0x7   :  { %p929_p2 = pnand %p927_p1, %p924_p0 }
   0x9   :  { %932 = shalt.err (!%p929_p2)
}
   0xa   :  { %s933_s26 = scalar_lea.vmem %s19_s16, 64  ;;  %p938_p4 = scmp.lt.s32.totalorder %s19_s16, %s19_s16 }
   0xb   :  { %p934_p3 = scmp.ne.s32.totalorder %s19_s16, %s933_s26  ;;  %p939_p5 = scmp.lt.s32.totalorder %s933_s26, %s933_s26 }
   0xd   :  { %p940_p6 = por %p939_p5, %p938_p4 }
   0xf   :  { %p941_p7 = pnand %p940_p6, %p934_p3 }
  0x11   :  { %944 = shalt.err (!%p941_p7)
}
  0x12   :  { %21 = dma.hbm_to_vmem [thread:$0]  %s1411_s0, 64, %s19_s16, [#allocation3]  }
  0x13   :  { %s945_s5 = scalar_lea.hbm %s1412_s1, 4096 }
  0x14   :  { %p946_p8 = scmp.ne.s32.totalorder %s1412_s1, %s945_s5  ;;  %p949_p9 = scmp.lt.u32.totalorder %s945_s5, %s1412_s1 }
  0x16   :  { %p951_p10 = pnand %p949_p9, %p946_p8 }
  0x18   :  { %954 = shalt.err (!%p951_p10)
}
  0x19   :  { %s955_s10 = scalar_lea.vmem %s1027_s18, 4096  ;;  %p960_p12 = scmp.lt.s32.totalorder %s1027_s18, %s1027_s18 }
  0x1a   :  { %p956_p11 = scmp.ne.s32.totalorder %s1027_s18, %s955_s10  ;;  %p961_p13 = scmp.lt.s32.totalorder %s955_s10, %s955_s10 }
  0x1c   :  { %p962_p0 = por %p961_p13, %p960_p12 }
  0x1e   :  { %p963_p1 = pnand %p962_p0, %p956_p11 }
  0x20   :  { %966 = shalt.err (!%p963_p1)
}
  0x21   :  { %s997_s0 = smov 128   ;;  %s998_s11 = smov 8  }
  0x22   :  { %33 = dma.hbm_to_vmem [thread:$0]  %s1412_s1, 4096, %s1027_s18, [#allocation6], %s997_s0, %s997_s0, %s998_s11  }
  0x23   :  { %989 = dma.done.wait [#allocation3], 64  }
  0x24   :  { %990 = vsyncadd [#allocation3], 4294967232 }
  0x25   :  { %991 = dma.done.wait [#allocation6], 4096  }
  0x26   :  { %992 = vsyncadd [#allocation6], 4294963200  ;;  %v1058_v0 = vld [vmem:[#allocation5 + $0x4] ss:$8 sps:$4 sm:$0xff]   ;;  %v1060_v1 = vld [vmem:[#allocation5] ss:$8 sps:$4 sm:$0xff]   ;;  %v83_v9 = vlaneseq }
  0x27   :  { %252 = vmatprep.subr.bf16.mxu0 %v1058_v0  ;;  %v1063_v2 = vld [vmem:[#allocation5 + $0x14] ss:$8 sps:$4 sm:$0xff]   ;;  %384 = vmatprep.subr.bf16.mxu1 %v1058_v0  ;;  %v1070_v3 = vld [vmem:[#allocation5 + $0x10] ss:$8 sps:$4 sm:$0xff]   ;;  %v1072_v4 = vld [vmem:[#allocation5 + $0x24] ss:$8 sps:$4 sm:$0xff]  }
  0x28   :  { %253 = vmatpush1.bf16.xpose.msra.mxu0 %v1060_v1  ;;  %385 = vmatpush1.bf16.msra.mxu1 %v1060_v1  ;;  %v1076_v5 = vld [vmem:[#allocation5 + $0x20] ss:$8 sps:$4 sm:$0xff]   ;;  %v1078_v6 = vld [vmem:[#allocation5 + $0x34] ss:$8 sps:$4 sm:$0xff]   ;;  %v999_v7 = vmov 1983009808  }
  0x29   :  { %254 = vmatprep.subr.bf16.mxu0 %v1063_v2  ;;  %386 = vmatprep.subr.bf16.mxu1 %v1063_v2  ;;  %v81_v8 = vunpack.c.l.s4 %v999_v7  ;;  %v1084_v10 = vld [vmem:[#allocation5 + $0x30] ss:$8 sps:$4 sm:$0xff]   ;;  %v1086_v11 = vld [vmem:[#allocation5 + $0x44] ss:$8 sps:$4 sm:$0xff]   ;;  %v1088_v13 = vshrl.u32 %v83_v9, 7  ;;  %vm293_vm0 = vcmask 1041408  }
  0x2a   :  { %v1092_v14 = vld [vmem:[#allocation5 + $0x40] ss:$8 sps:$4 sm:$0xff]   ;;  %v1094_v15 = vld [vmem:[#allocation5 + $0x54] ss:$8 sps:$4 sm:$0xff]   ;;  %v1103_v17 = vld [vmem:[#allocation5 + $0x50] ss:$8 sps:$4 sm:$0xff]  }
  0x2b   :  { %v82_v12 = vunpack.c.0.s8 %v81_v8  ;;  %v1105_v18 = vld [vmem:[#allocation2] sm:$0xf]  ;;  %v1107_v19 = vld [vmem:[#allocation5 + $0x64] ss:$8 sps:$4 sm:$0xff]   ;;  %v1117_v22 = vld [vmem:[#allocation5 + $0x60] ss:$8 sps:$4 sm:$0xff]  }
  0x2c   :  { %387 = vmatpush1.bf16.msra.mxu1 %v1070_v3  ;;  %v1120_v24 = vld [vmem:[#allocation5 + $0x74] ss:$8 sps:$4 sm:$0xff]   ;;  %v1124_v25 = vld [vmem:[#allocation5 + $0x70] ss:$8 sps:$4 sm:$0xff]   ;;  %v1127_v26 = vld [vmem:[#allocation5 + $0x84] ss:$8 sps:$4 sm:$0xff]  }
  0x2d   :  { %388 = vmatprep.subr.bf16.mxu1 %v1072_v4  ;;  %v1097_v16 = vsub.s32 %v82_v12, %v1088_v13  ;;  %v1131_v27 = vld [vmem:[#allocation5 + $0x80] ss:$8 sps:$4 sm:$0xff]   ;;  %v1133_v28 = vld [vmem:[#allocation5 + $0x94] ss:$8 sps:$4 sm:$0xff]   ;;  %v1139_v29 = vld [vmem:[#allocation5 + $0x90] ss:$8 sps:$4 sm:$0xff]  }
  0x2e   :  { %v1141_v30 = vld [vmem:[#allocation5 + $0xa4] ss:$8 sps:$4 sm:$0xff]   ;;  %v1145_v31 = vld [vmem:[#allocation5 + $0xa0] ss:$8 sps:$4 sm:$0xff]   ;;  %v1147_v32 = vld [vmem:[#allocation5 + $0xb4] ss:$8 sps:$4 sm:$0xff]  }
  0x2f   :  { %v1111_v20 = vrot.slane %v1105_v18, %v1097_v16  ;;  %v1153_v33 = vld [vmem:[#allocation5 + $0xb0] ss:$8 sps:$4 sm:$0xff]   ;;  %v1155_v34 = vld [vmem:[#allocation5 + $0xc4] ss:$8 sps:$4 sm:$0xff]   ;;  %v1159_v35 = vld [vmem:[#allocation5 + $0xc0] ss:$8 sps:$4 sm:$0xff]  }
  0x30   :  { %255 = vmatpush1.bf16.xpose.msra.mxu0 %v1070_v3  ;;  %389 = vmatpush1.bf16.msra.mxu1 %v1076_v5  ;;  %v1161_v36 = vld [vmem:[#allocation5 + $0xd4] ss:$8 sps:$4 sm:$0xff]   ;;  %v1167_v37 = vld [vmem:[#allocation5 + $0xd0] ss:$8 sps:$4 sm:$0xff]   ;;  %v1169_v38 = vld [vmem:[#allocation5 + $0xe4] ss:$8 sps:$4 sm:$0xff]  }
  0x31   :  { %256 = vmatprep.subr.bf16.mxu0 %v1072_v4  ;;  %390 = vmatprep.subr.bf16.mxu1 %v1078_v6  ;;  %v87_v21 = vcombine.high %v1111_v20, %v1111_v20  ;;  %v1173_v39 = vld [vmem:[#allocation5 + $0xe0] ss:$8 sps:$4 sm:$0xff]   ;;  %v1175_v40 = vld [vmem:[#allocation5 + $0xf4] ss:$8 sps:$4 sm:$0xff]   ;;  %v1181_v41 = vld [vmem:[#allocation5 + $0xf0] ss:$8 sps:$4 sm:$0xff]   ;;  %v90_v42 = vpack.c.bf16 %v1111_v20, %v1111_v20 }
  0x33   :  { %v91_v23 = vpack.c.bf16 %v87_v21, %v87_v21 }
  0x34   :  { %391 = vmatpush1.bf16.msra.mxu1 %v1084_v10 }
  0x35   :  { %392 = vmatprep.subr.bf16.mxu1 %v1086_v11  ;;  %284 = vmatprep.mubr.bf16.mxu0 %v91_v23 }
  0x38   :  { %257 = vmatpush1.bf16.xpose.msra.mxu0 %v1076_v5  ;;  %393 = vmatpush1.bf16.msra.mxu1 %v1092_v14 }
  0x39   :  { %258 = vmatprep.subr.bf16.mxu0 %v1078_v6  ;;  %394 = vmatprep.subr.bf16.mxu1 %v1094_v15 }
  0x3c   :  { %395 = vmatpush1.bf16.msra.mxu1 %v1103_v17 }
  0x3d   :  { %396 = vmatprep.subr.bf16.mxu1 %v1107_v19 }
  0x40   :  { %259 = vmatpush1.bf16.xpose.msra.mxu0 %v1084_v10  ;;  %397 = vmatpush1.bf16.msra.mxu1 %v1117_v22 }
  0x41   :  { %260 = vmatprep.subr.bf16.mxu0 %v1086_v11  ;;  %398 = vmatprep.subr.bf16.mxu1 %v1120_v24 }
  0x44   :  { %399 = vmatpush1.bf16.msra.mxu1 %v1124_v25 }
  0x45   :  { %400 = vmatprep.subr.bf16.mxu1 %v1127_v26 }
  0x48   :  { %261 = vmatpush1.bf16.xpose.msra.mxu0 %v1092_v14  ;;  %401 = vmatpush1.bf16.msra.mxu1 %v1131_v27 }
  0x49   :  { %262 = vmatprep.subr.bf16.mxu0 %v1094_v15  ;;  %402 = vmatprep.subr.bf16.mxu1 %v1133_v28 }
  0x4c   :  { %403 = vmatpush1.bf16.msra.mxu1 %v1139_v29 }
  0x4d   :  { %404 = vmatprep.subr.bf16.mxu1 %v1141_v30 }
  0x50   :  { %263 = vmatpush1.bf16.xpose.msra.mxu0 %v1103_v17  ;;  %405 = vmatpush1.bf16.msra.mxu1 %v1145_v31 }
  0x51   :  { %264 = vmatprep.subr.bf16.mxu0 %v1107_v19  ;;  %406 = vmatprep.subr.bf16.mxu1 %v1147_v32 }
  0x54   :  { %407 = vmatpush1.bf16.msra.mxu1 %v1153_v33 }
  0x55   :  { %408 = vmatprep.subr.bf16.mxu1 %v1155_v34 }
  0x58   :  { %265 = vmatpush1.bf16.xpose.msra.mxu0 %v1117_v22  ;;  %409 = vmatpush1.bf16.msra.mxu1 %v1159_v35 }
  0x59   :  { %266 = vmatprep.subr.bf16.mxu0 %v1120_v24  ;;  %410 = vmatprep.subr.bf16.mxu1 %v1161_v36 }
  0x5c   :  { %411 = vmatpush1.bf16.msra.mxu1 %v1167_v37 }
  0x5d   :  { %412 = vmatprep.subr.bf16.mxu1 %v1169_v38 }
  0x60   :  { %267 = vmatpush1.bf16.xpose.msra.mxu0 %v1124_v25  ;;  %413 = vmatpush1.bf16.msra.mxu1 %v1173_v39 }
  0x61   :  { %268 = vmatprep.subr.bf16.mxu0 %v1127_v26  ;;  %414 = vmatprep.subr.bf16.mxu1 %v1175_v40 }
  0x64   :  { %415 = vmatpush1.bf16.msra.mxu1 %v1181_v41 }
  0x65   :  { %450 = vmatprep.subr.bf16.mxu1 %v1058_v0 }
  0x68   :  { %269 = vmatpush1.bf16.xpose.msra.mxu0 %v1131_v27 }
  0x69   :  { %270 = vmatprep.subr.bf16.mxu0 %v1133_v28 }
  0x70   :  { %271 = vmatpush1.bf16.xpose.msra.mxu0 %v1139_v29 }
  0x71   :  { %272 = vmatprep.subr.bf16.mxu0 %v1141_v30 }
  0x78   :  { %273 = vmatpush1.bf16.xpose.msra.mxu0 %v1145_v31 }
  0x79   :  { %274 = vmatprep.subr.bf16.mxu0 %v1147_v32 }
  0x80   :  { %275 = vmatpush1.bf16.xpose.msra.mxu0 %v1153_v33 }
  0x81   :  { %276 = vmatprep.subr.bf16.mxu0 %v1155_v34 }
  0x88   :  { %277 = vmatpush1.bf16.xpose.msra.mxu0 %v1159_v35 }
  0x89   :  { %278 = vmatprep.subr.bf16.mxu0 %v1161_v36 }
  0x90   :  { %279 = vmatpush1.bf16.xpose.msra.mxu0 %v1167_v37 }
  0x91   :  { %280 = vmatprep.subr.bf16.mxu0 %v1169_v38 }
  0x98   :  { %281 = vmatpush1.bf16.xpose.msra.mxu0 %v1173_v39 }
  0x99   :  { %282 = vmatprep.subr.bf16.mxu0 %v1175_v40 }
  0xa0   :  { %283 = vmatpush1.bf16.xpose.msra.mxu0 %v1181_v41 }
  0xa1   :  { %569 = vmatprep.subr.bf16.mxu0 %v1058_v0 }
  0xa7   :  { %285 = vmatmul.mubr.bf16.vlgmr.msra.gmra.mrb[0].mxu0 %v90_v42 }
  0xa8   :  { %570 = vmatpush1.bf16.msra.mxu0 %v1060_v1 }
  0xa9   :  { %571 = vmatprep.subr.bf16.mxu0 %v1063_v2 }
  0xac   :  { %572 = vmatpush1.bf16.msra.mxu0 %v1070_v3 }
  0xad   :  { %573 = vmatprep.subr.bf16.mxu0 %v1072_v4 }
  0xb0   :  { %574 = vmatpush1.bf16.msra.mxu0 %v1076_v5 }
  0xb1   :  { %575 = vmatprep.subr.bf16.mxu0 %v1078_v6 }
  0xb4   :  { %576 = vmatpush1.bf16.msra.mxu0 %v1084_v10 }
  0xb5   :  { %577 = vmatprep.subr.bf16.mxu0 %v1086_v11 }
  0xb8   :  { %578 = vmatpush1.bf16.msra.mxu0 %v1092_v14 }
  0xb9   :  { %579 = vmatprep.subr.bf16.mxu0 %v1094_v15 }
  0xbc   :  { %580 = vmatpush1.bf16.msra.mxu0 %v1103_v17 }
  0xbd   :  { %581 = vmatprep.subr.bf16.mxu0 %v1107_v19 }
  0xc0   :  { %582 = vmatpush1.bf16.msra.mxu0 %v1117_v22 }
  0xc1   :  { %583 = vmatprep.subr.bf16.mxu0 %v1120_v24 }
  0xc4   :  { %584 = vmatpush1.bf16.msra.mxu0 %v1124_v25 }
  0xc5   :  { %585 = vmatprep.subr.bf16.mxu0 %v1127_v26 }
  0xc8   :  { %586 = vmatpush1.bf16.msra.mxu0 %v1131_v27 }
  0xc9   :  { %587 = vmatprep.subr.bf16.mxu0 %v1133_v28 }
  0xcc   :  { %588 = vmatpush1.bf16.msra.mxu0 %v1139_v29 }
  0xcd   :  { %589 = vmatprep.subr.bf16.mxu0 %v1141_v30 }
  0xd0   :  { %590 = vmatpush1.bf16.msra.mxu0 %v1145_v31 }
  0xd1   :  { %591 = vmatprep.subr.bf16.mxu0 %v1147_v32 }
  0xd4   :  { %592 = vmatpush1.bf16.msra.mxu0 %v1153_v33 }
  0xd5   :  { %593 = vmatprep.subr.bf16.mxu0 %v1155_v34 }
  0xd8   :  { %594 = vmatpush1.bf16.msra.mxu0 %v1159_v35 }
  0xd9   :  { %595 = vmatprep.subr.bf16.mxu0 %v1161_v36 }
  0xdc   :  { %596 = vmatpush1.bf16.msra.mxu0 %v1167_v37 }
  0xdd   :  { %597 = vmatprep.subr.bf16.mxu0 %v1169_v38 }
  0xe0   :  { %598 = vmatpush1.bf16.msra.mxu0 %v1173_v39 }
  0xe1   :  { %599 = vmatprep.subr.bf16.mxu0 %v1175_v40 }
  0xe4   :  { %600 = vmatpush1.bf16.msra.mxu0 %v1181_v41 }
  0xe5   :  { %635 = vmatprep.subr.bf16.mxu0 %v1058_v0 }
 0x17a   :  { %v286_v43 = vpop.f32.mrb[0].mxu0 }
 0x17b   :  { %v294_v44 = vsel %vm293_vm0, %v286_v43, 0.0  ;;  %v288_v45 = vpop.f32.mrb[1].mxu0 }
 0x17c   :  { %v295_v46 = vrot.slane %v294_v44, 4  ;;  %v301_v47 = vsel %vm293_vm0, %v288_v45, 0.0  ;;  %v290_v48 = vpop.f32.mrb[2].mxu0 }
 0x17d   :  { %v302_v49 = vrot.slane %v301_v47, 4  ;;  %v291_v50 = vpop.f32.mrb[3].mxu0 }
 0x17e   :  { %v296_v51 = vadd.f32 %v295_v46, %v294_v44 }
 0x17f   :  { %v303_v52 = vadd.f32 %v302_v49, %v301_v47 }
 0x180   :  { %v297_v53 = vrot.slane %v296_v51, 2 }
 0x181   :  { %v304_v54 = vrot.slane %v303_v52, 2 }
 0x182   :  { %v298_v55 = vadd.f32 %v297_v53, %v296_v51 }
 0x183   :  { %v305_v56 = vadd.f32 %v304_v54, %v303_v52 }
 0x184   :  { %v299_v57 = vrot.slane %v298_v55, 1 }
 0x185   :  { %v306_v58 = vrot.slane %v305_v56, 1 }
 0x186   :  { %v300_v59 = vadd.f32 %v299_v57, %v298_v55 }
 0x187   :  { %v307_v60 = vadd.f32 %v306_v58, %v305_v56  ;;  %v1000_v56 = vmov 1966171168  }
 0x188   :  { %v309_v61 = vmul.f32 0.5, %v300_v59  ;;  %v339_v57 = vunpack.c.l.s4 %v1000_v56 }
 0x189   :  { %v310_v62 = vmul.f32 0.5, %v307_v60 }
 0x18a   :  { %v311_v63 = vsub.f32 %v286_v43, %v309_v61  ;;  %v340_v58 = vunpack.c.0.s8 %v339_v57 }
 0x18b   :  { %v312_v7 = vsub.f32 %v288_v45, %v310_v62 }
 0x18c   :  { %v313_v8 = vmul.f32 %v311_v63, %v311_v63  ;;  %v1240_v60 = vsub.s32 %v340_v58, %v1088_v13 }
 0x18d   :  { %v314_v9 = vmul.f32 %v312_v7, %v312_v7 }
 0x18e   :  { %v315_v12 = vsel %vm293_vm0, %v313_v8, 0.0 }
 0x18f   :  { %v316_v20 = vrot.slane %v315_v12, 4  ;;  %v322_v21 = vsel %vm293_vm0, %v314_v9, 0.0  ;;  %v1246_v9 = vld [vmem:[%s1413_s2] sm:$0x3]  ;;  %s1001_s2 = smov [#allocation7]  }
 0x190   :  { %v323_v23 = vrot.slane %v322_v21, 4 }
 0x191   :  { %v317_v42 = vadd.f32 %v316_v20, %v315_v12  ;;  %v1250_v20 = vsub.s32 0, %v1088_v13 }
 0x192   :  { %v324_v44 = vadd.f32 %v323_v23, %v322_v21  ;;  %v1253_v21 = vsub.s32 1, %v1088_v13  ;;  %v78_v23 = vld [vmem:[%s1414_s3] sm:$0x3]  ;;  %s814_s3 = sshll.u32 %s1001_s2, 4  ;;  %s815_s3 = int_to_ptr.vmem [resolvable:$true] %s814_s3 }
 0x193   :  { %v318_v46 = vrot.slane %v317_v42, 2  ;;  %s967_s17 = scalar_lea.vmem %s815_s3, 64  ;;  %p972_p3 = scmp.lt.s32.totalorder %s815_s3, %s815_s3 }
 0x194   :  { %v325_v47 = vrot.slane %v324_v44, 2  ;;  %p968_p2 = scmp.ne.s32.totalorder %s815_s3, %s967_s17  ;;  %p973_p4 = scmp.lt.s32.totalorder %s967_s17, %s967_s17 }
 0x195   :  { %v319_v48 = vadd.f32 %v318_v46, %v317_v42  ;;  %v1261_v46 = vrot.slane %v78_v23, %v1250_v20 }
 0x196   :  { %v326_v49 = vadd.f32 %v325_v47, %v324_v44  ;;  %v1264_v47 = vrot.slane %v78_v23, %v1253_v21  ;;  %p974_p5 = por %p973_p4, %p972_p3 }
 0x197   :  { %v320_v50 = vrot.slane %v319_v48, 1 }
 0x198   :  { %v327_v51 = vrot.slane %v326_v49, 1  ;;  %p975_p6 = pnand %p974_p5, %p968_p2 }
 0x199   :  { %v321_v52 = vadd.f32 %v320_v50, %v319_v48 }
 0x19a   :  { %v328_v53 = vadd.f32 %v327_v51, %v326_v49 }
 0x19b   :  { %v329_v43 = vmul.f32 0.5, %v321_v52 }
 0x19c   :  { %v330_v45 = vmul.f32 0.5, %v328_v53 }
 0x19d   :  { %v331_v54 = vadd.f32 1e-05, %v329_v43 }
 0x19e   :  { %v332_v55 = vadd.f32 1e-05, %v330_v45 }
 0x19f   :  { %911 = vrsqrt.f32 %v331_v54 }
 0x1a0   :  { %913 = vrsqrt.f32 %v332_v55 }
 0x1a9   :  { %v912_v59 = vpop.eup %911 }
 0x1aa   :  { %v914_v61 = vpop.eup %913 }
 0x1ab   :  { %v337_v62 = vcombine.low %v912_v59, %v914_v61 }
 0x1ad   :  { %v344_v8 = vrot.slane %v337_v62, %v1240_v60 }
 0x1af   :  { %v351_v12 = vrot.slane %v344_v8, %v1240_v60 }
 0x1b1   :  { %v353_v42 = vmul.f32 %v351_v12, %v1246_v9 }
 0x1b3   :  { %v362_v44 = vrot.slane %v353_v42, %v1253_v21  ;;  %v358_v48 = vrot.slane %v353_v42, %v1250_v20 }
 0x1b5   :  { %v366_v49 = vmul.f32 %v362_v44, %v312_v7  ;;  %v365_v50 = vmul.f32 %v358_v48, %v311_v63 }
 0x1b7   :  { %v379_v13 = vadd.f32 %v1264_v47, %v366_v49  ;;  %v378_v51 = vadd.f32 %v1261_v46, %v365_v50 }
 0x1b9   :  { %v381_v52 = vmax.f32 %v379_v13, 0.0  ;;  %v380_v53 = vmax.f32 %v378_v51, 0.0 }
 0x1bb   :  { %v383_v43 = vpack.c.bf16 %v381_v52, %v381_v52  ;;  %v382_v45 = vpack.c.bf16 %v380_v53, %v380_v53 }
 0x1bd   :  { %416 = vmatprep.mubr.bf16.mxu1 %v383_v43 }
 0x1be   :  { %417 = vmatmul.mubr.bf16.vlgmr.msra.gmra.mrb[0].mxu1 %v382_v45 }
 0x1bf   :  { %451 = vmatpush1.bf16.xpose.msra.mxu1 %v1060_v1 }
 0x1c0   :  { %452 = vmatprep.subr.bf16.mxu1 %v1063_v2 }
 0x1c7   :  { %453 = vmatpush1.bf16.xpose.msra.mxu1 %v1070_v3 }
 0x1c8   :  { %454 = vmatprep.subr.bf16.mxu1 %v1072_v4 }
 0x1cf   :  { %455 = vmatpush1.bf16.xpose.msra.mxu1 %v1076_v5 }
 0x1d0   :  { %456 = vmatprep.subr.bf16.mxu1 %v1078_v6 }
 0x1d7   :  { %457 = vmatpush1.bf16.xpose.msra.mxu1 %v1084_v10 }
 0x1d8   :  { %458 = vmatprep.subr.bf16.mxu1 %v1086_v11 }
 0x1df   :  { %459 = vmatpush1.bf16.xpose.msra.mxu1 %v1092_v14 }
 0x1e0   :  { %460 = vmatprep.subr.bf16.mxu1 %v1094_v15 }
 0x1e7   :  { %461 = vmatpush1.bf16.xpose.msra.mxu1 %v1103_v17 }
 0x1e8   :  { %462 = vmatprep.subr.bf16.mxu1 %v1107_v19 }
 0x1ef   :  { %463 = vmatpush1.bf16.xpose.msra.mxu1 %v1117_v22 }
 0x1f0   :  { %464 = vmatprep.subr.bf16.mxu1 %v1120_v24 }
 0x1f7   :  { %465 = vmatpush1.bf16.xpose.msra.mxu1 %v1124_v25 }
 0x1f8   :  { %466 = vmatprep.subr.bf16.mxu1 %v1127_v26 }
 0x1ff   :  { %467 = vmatpush1.bf16.xpose.msra.mxu1 %v1131_v27 }
 0x200   :  { %468 = vmatprep.subr.bf16.mxu1 %v1133_v28 }
 0x207   :  { %469 = vmatpush1.bf16.xpose.msra.mxu1 %v1139_v29 }
 0x208   :  { %470 = vmatprep.subr.bf16.mxu1 %v1141_v30 }
 0x20f   :  { %471 = vmatpush1.bf16.xpose.msra.mxu1 %v1145_v31 }
 0x210   :  { %472 = vmatprep.subr.bf16.mxu1 %v1147_v32 }
 0x217   :  { %473 = vmatpush1.bf16.xpose.msra.mxu1 %v1153_v33 }
 0x218   :  { %474 = vmatprep.subr.bf16.mxu1 %v1155_v34 }
 0x21f   :  { %475 = vmatpush1.bf16.xpose.msra.mxu1 %v1159_v35 }
 0x220   :  { %476 = vmatprep.subr.bf16.mxu1 %v1161_v36 }
 0x227   :  { %477 = vmatpush1.bf16.xpose.msra.mxu1 %v1167_v37 }
 0x228   :  { %478 = vmatprep.subr.bf16.mxu1 %v1169_v38 }
 0x22f   :  { %479 = vmatpush1.bf16.xpose.msra.mxu1 %v1173_v39 }
 0x230   :  { %480 = vmatprep.subr.bf16.mxu1 %v1175_v40 }
 0x237   :  { %481 = vmatpush1.bf16.xpose.msra.mxu1 %v1181_v41 }
 0x238   :  { %754 = vmatprep.subr.bf16.mxu1 %v1058_v0 }
 0x291   :  { %v418_v63 = vpop.f32.mrb[0].mxu1 }
 0x292   :  { %v420_v7 = vpop.f32.mrb[1].mxu1 }
 0x293   :  { %v427_v54 = vcombine.low %v418_v63, %v420_v7  ;;  %v422_v55 = vpop.f32.mrb[2].mxu1 }
 0x294   :  { %v423_v56 = vpop.f32.mrb[3].mxu1 }
 0x295   :  { %v434_v57 = vrot.slane %v427_v54, %v1097_v16 }
 0x297   :  { %v1303_v58 = vsub.f32 %v1105_v18, %v434_v57 }
 0x299   :  { %v444_v59 = vrot.slane %v1303_v58, %v1097_v16 }
 0x29b   :  { %v445_v61 = vcombine.high %v444_v59, %v444_v59  ;;  %v448_v8 = vpack.c.bf16 %v444_v59, %v444_v59 }
 0x29d   :  { %v449_v62 = vpack.c.bf16 %v445_v61, %v445_v61 }
 0x29f   :  { %482 = vmatprep.mubr.bf16.mxu1 %v449_v62 }
 0x2a0   :  { %483 = vmatmul.mubr.bf16.vlgmr.msra.gmra.mrb[4].mxu1 %v448_v8 }
 0x2a1   :  { %755 = vmatpush1.bf16.msra.mxu1 %v1060_v1 }
 0x2a2   :  { %756 = vmatprep.subr.bf16.mxu1 %v1063_v2 }
 0x2a5   :  { %757 = vmatpush1.bf16.msra.mxu1 %v1070_v3 }
 0x2a6   :  { %758 = vmatprep.subr.bf16.mxu1 %v1072_v4 }
 0x2a9   :  { %759 = vmatpush1.bf16.msra.mxu1 %v1076_v5 }
 0x2aa   :  { %760 = vmatprep.subr.bf16.mxu1 %v1078_v6 }
 0x2ad   :  { %761 = vmatpush1.bf16.msra.mxu1 %v1084_v10 }
 0x2ae   :  { %762 = vmatprep.subr.bf16.mxu1 %v1086_v11 }
 0x2b1   :  { %763 = vmatpush1.bf16.msra.mxu1 %v1092_v14 }
 0x2b2   :  { %764 = vmatprep.subr.bf16.mxu1 %v1094_v15 }
 0x2b5   :  { %765 = vmatpush1.bf16.msra.mxu1 %v1103_v17 }
 0x2b6   :  { %766 = vmatprep.subr.bf16.mxu1 %v1107_v19 }
 0x2b9   :  { %767 = vmatpush1.bf16.msra.mxu1 %v1117_v22 }
 0x2ba   :  { %768 = vmatprep.subr.bf16.mxu1 %v1120_v24 }
 0x2bd   :  { %769 = vmatpush1.bf16.msra.mxu1 %v1124_v25 }
 0x2be   :  { %770 = vmatprep.subr.bf16.mxu1 %v1127_v26 }
 0x2c1   :  { %771 = vmatpush1.bf16.msra.mxu1 %v1131_v27 }
 0x2c2   :  { %772 = vmatprep.subr.bf16.mxu1 %v1133_v28 }
 0x2c5   :  { %773 = vmatpush1.bf16.msra.mxu1 %v1139_v29 }
 0x2c6   :  { %774 = vmatprep.subr.bf16.mxu1 %v1141_v30 }
 0x2c9   :  { %775 = vmatpush1.bf16.msra.mxu1 %v1145_v31 }
 0x2ca   :  { %776 = vmatprep.subr.bf16.mxu1 %v1147_v32 }
 0x2cd   :  { %777 = vmatpush1.bf16.msra.mxu1 %v1153_v33 }
 0x2ce   :  { %778 = vmatprep.subr.bf16.mxu1 %v1155_v34 }
 0x2d1   :  { %779 = vmatpush1.bf16.msra.mxu1 %v1159_v35 }
 0x2d2   :  { %780 = vmatprep.subr.bf16.mxu1 %v1161_v36 }
 0x2d5   :  { %781 = vmatpush1.bf16.msra.mxu1 %v1167_v37 }
 0x2d6   :  { %782 = vmatprep.subr.bf16.mxu1 %v1169_v38 }
 0x2d9   :  { %783 = vmatpush1.bf16.msra.mxu1 %v1173_v39 }
 0x2da   :  { %784 = vmatprep.subr.bf16.mxu1 %v1175_v40 }
 0x2dd   :  { %785 = vmatpush1.bf16.msra.mxu1 %v1181_v41 }
 0x373   :  { %v484_v0 = vpop.f32.mrb[4].mxu1 }
 0x374   :  { %v491_v18 = vsel %vm293_vm0, %v484_v0, 0.0  ;;  %v486_v12 = vpop.f32.mrb[5].mxu1 }
 0x375   :  { %v492_v23 = vrot.slane %v491_v18, 4  ;;  %v498_v42 = vsel %vm293_vm0, %v486_v12, 0.0  ;;  %v488_v44 = vpop.f32.mrb[6].mxu1 }
 0x376   :  { %v499_v48 = vrot.slane %v498_v42, 4  ;;  %v489_v49 = vpop.f32.mrb[7].mxu1 }
 0x377   :  { %v493_v50 = vadd.f32 %v492_v23, %v491_v18 }
 0x378   :  { %v500_v13 = vadd.f32 %v499_v48, %v498_v42 }
 0x379   :  { %v494_v51 = vrot.slane %v493_v50, 2 }
 0x37a   :  { %v501_v52 = vrot.slane %v500_v13, 2 }
 0x37b   :  { %v495_v53 = vadd.f32 %v494_v51, %v493_v50 }
 0x37c   :  { %v502_v43 = vadd.f32 %v501_v52, %v500_v13 }
 0x37d   :  { %v496_v45 = vrot.slane %v495_v53, 1 }
 0x37e   :  { %v503_v63 = vrot.slane %v502_v43, 1 }
 0x37f   :  { %v497_v7 = vadd.f32 %v496_v45, %v495_v53 }
 0x380   :  { %v504_v54 = vadd.f32 %v503_v63, %v502_v43 }
 0x381   :  { %v505_v55 = vmul.f32 0.5, %v497_v7 }
 0x382   :  { %v506_v56 = vmul.f32 0.5, %v504_v54 }
 0x383   :  { %v507_v57 = vsub.f32 %v484_v0, %v505_v55 }
 0x384   :  { %v508_v59 = vsub.f32 %v486_v12, %v506_v56 }
 0x385   :  { %v509_v61 = vmul.f32 %v507_v57, %v507_v57 }
 0x386   :  { %v510_v62 = vmul.f32 %v508_v59, %v508_v59 }
 0x387   :  { %v511_v8 = vsel %vm293_vm0, %v509_v61, 0.0 }
 0x388   :  { %v512_v44 = vrot.slane %v511_v8, 4  ;;  %v518_v18 = vsel %vm293_vm0, %v510_v62, 0.0 }
 0x389   :  { %v519_v23 = vrot.slane %v518_v18, 4 }
 0x38a   :  { %v513_v42 = vadd.f32 %v512_v44, %v511_v8 }
 0x38b   :  { %v520_v48 = vadd.f32 %v519_v23, %v518_v18 }
 0x38c   :  { %v514_v49 = vrot.slane %v513_v42, 2 }
 0x38d   :  { %v521_v50 = vrot.slane %v520_v48, 2 }
 0x38e   :  { %v515_v13 = vadd.f32 %v514_v49, %v513_v42 }
 0x38f   :  { %v522_v51 = vadd.f32 %v521_v50, %v520_v48 }
 0x390   :  { %v516_v52 = vrot.slane %v515_v13, 1 }
 0x391   :  { %v523_v53 = vrot.slane %v522_v51, 1 }
 0x392   :  { %v517_v43 = vadd.f32 %v516_v52, %v515_v13 }
 0x393   :  { %v524_v45 = vadd.f32 %v523_v53, %v522_v51 }
 0x394   :  { %v525_v0 = vmul.f32 0.5, %v517_v43 }
 0x395   :  { %v526_v12 = vmul.f32 0.5, %v524_v45 }
 0x396   :  { %v527_v63 = vadd.f32 1e-05, %v525_v0 }
 0x397   :  { %v528_v7 = vadd.f32 1e-05, %v526_v12 }
 0x398   :  { %915 = vrsqrt.f32 %v527_v63 }
 0x399   :  { %917 = vrsqrt.f32 %v528_v7 }
 0x3a2   :  { %v916_v54 = vpop.eup %915 }
 0x3a3   :  { %v918_v55 = vpop.eup %917 }
 0x3a4   :  { %v533_v56 = vcombine.low %v916_v54, %v918_v55 }
 0x3a6   :  { %v540_v61 = vrot.slane %v533_v56, %v1240_v60 }
 0x3a8   :  { %v547_v62 = vrot.slane %v540_v61, %v1240_v60 }
 0x3aa   :  { %v549_v8 = vmul.f32 %v547_v62, %v1246_v9 }
 0x3ac   :  { %v554_v44 = vrot.slane %v549_v8, %v1250_v20  ;;  %v558_v18 = vrot.slane %v549_v8, %v1253_v21 }
 0x3ae   :  { %v562_v23 = vmul.f32 %v558_v18, %v508_v59  ;;  %v561_v42 = vmul.f32 %v554_v44, %v507_v57 }
 0x3b0   :  { %v564_v48 = vadd.f32 %v562_v23, %v1264_v47  ;;  %v563_v49 = vadd.f32 %v561_v42, %v1261_v46 }
 0x3b2   :  { %v566_v50 = vmax.f32 %v564_v48, 0.0  ;;  %v565_v13 = vmax.f32 %v563_v49, 0.0 }
 0x3b4   :  { %v568_v51 = vpack.c.bf16 %v566_v50, %v566_v50  ;;  %v567_v52 = vpack.c.bf16 %v565_v13, %v565_v13 }
 0x3b6   :  { %601 = vmatprep.mubr.bf16.mxu0 %v568_v51 }
 0x3b7   :  { %602 = vmatmul.mubr.bf16.vlgmr.msra.gmra.mrb[4].mxu0 %v567_v52 }
 0x3b8   :  { %636 = vmatpush1.bf16.xpose.msra.mxu0 %v1060_v1 }
 0x3b9   :  { %637 = vmatprep.subr.bf16.mxu0 %v1063_v2 }
 0x3c0   :  { %638 = vmatpush1.bf16.xpose.msra.mxu0 %v1070_v3 }
 0x3c1   :  { %639 = vmatprep.subr.bf16.mxu0 %v1072_v4 }
 0x3c8   :  { %640 = vmatpush1.bf16.xpose.msra.mxu0 %v1076_v5 }
 0x3c9   :  { %641 = vmatprep.subr.bf16.mxu0 %v1078_v6 }
 0x3d0   :  { %642 = vmatpush1.bf16.xpose.msra.mxu0 %v1084_v10 }
 0x3d1   :  { %643 = vmatprep.subr.bf16.mxu0 %v1086_v11 }
 0x3d8   :  { %644 = vmatpush1.bf16.xpose.msra.mxu0 %v1092_v14 }
 0x3d9   :  { %645 = vmatprep.subr.bf16.mxu0 %v1094_v15 }
 0x3e0   :  { %646 = vmatpush1.bf16.xpose.msra.mxu0 %v1103_v17 }
 0x3e1   :  { %647 = vmatprep.subr.bf16.mxu0 %v1107_v19 }
 0x3e8   :  { %648 = vmatpush1.bf16.xpose.msra.mxu0 %v1117_v22 }
 0x3e9   :  { %649 = vmatprep.subr.bf16.mxu0 %v1120_v24 }
 0x3f0   :  { %650 = vmatpush1.bf16.xpose.msra.mxu0 %v1124_v25 }
 0x3f1   :  { %651 = vmatprep.subr.bf16.mxu0 %v1127_v26 }
 0x3f8   :  { %652 = vmatpush1.bf16.xpose.msra.mxu0 %v1131_v27 }
 0x3f9   :  { %653 = vmatprep.subr.bf16.mxu0 %v1133_v28 }
 0x400   :  { %654 = vmatpush1.bf16.xpose.msra.mxu0 %v1139_v29 }
 0x401   :  { %655 = vmatprep.subr.bf16.mxu0 %v1141_v30 }
 0x408   :  { %656 = vmatpush1.bf16.xpose.msra.mxu0 %v1145_v31 }
 0x409   :  { %657 = vmatprep.subr.bf16.mxu0 %v1147_v32 }
 0x410   :  { %658 = vmatpush1.bf16.xpose.msra.mxu0 %v1153_v33 }
 0x411   :  { %659 = vmatprep.subr.bf16.mxu0 %v1155_v34 }
 0x418   :  { %660 = vmatpush1.bf16.xpose.msra.mxu0 %v1159_v35 }
 0x419   :  { %661 = vmatprep.subr.bf16.mxu0 %v1161_v36 }
 0x420   :  { %662 = vmatpush1.bf16.xpose.msra.mxu0 %v1167_v37 }
 0x421   :  { %663 = vmatprep.subr.bf16.mxu0 %v1169_v38 }
 0x428   :  { %664 = vmatpush1.bf16.xpose.msra.mxu0 %v1173_v39 }
 0x429   :  { %665 = vmatprep.subr.bf16.mxu0 %v1175_v40 }
 0x430   :  { %666 = vmatpush1.bf16.xpose.msra.mxu0 %v1181_v41 }
 0x48a   :  { %v603_v1 = vpop.f32.mrb[4].mxu0 }
 0x48b   :  { %v605_v2 = vpop.f32.mrb[5].mxu0 }
 0x48c   :  { %v612_v3 = vcombine.low %v603_v1, %v605_v2  ;;  %v607_v4 = vpop.f32.mrb[6].mxu0 }
 0x48d   :  { %v608_v5 = vpop.f32.mrb[7].mxu0 }
 0x48e   :  { %v619_v6 = vrot.slane %v612_v3, %v1097_v16 }
 0x490   :  { %v1382_v10 = vsub.f32 %v1303_v58, %v619_v6 }
 0x492   :  { %v629_v11 = vrot.slane %v1382_v10, %v1097_v16 }
 0x494   :  { %v630_v14 = vcombine.high %v629_v11, %v629_v11  ;;  %v633_v17 = vpack.c.bf16 %v629_v11, %v629_v11 }
 0x496   :  { %v634_v15 = vpack.c.bf16 %v630_v14, %v630_v14 }
 0x498   :  { %667 = vmatprep.mubr.bf16.mxu0 %v634_v15 }
 0x499   :  { %668 = vmatmul.mubr.bf16.vlgmr.msra.gmra.mrb[8].mxu0 %v633_v17 }
 0x56c   :  { %v669_v19 = vpop.f32.mrb[8].mxu0 }
 0x56d   :  { %v676_v22 = vsel %vm293_vm0, %v669_v19, 0.0  ;;  %v671_v24 = vpop.f32.mrb[9].mxu0 }
 0x56e   :  { %v677_v25 = vrot.slane %v676_v22, 4  ;;  %v683_v26 = vsel %vm293_vm0, %v671_v24, 0.0  ;;  %v673_v27 = vpop.f32.mrb[10].mxu0 }
 0x56f   :  { %v684_v28 = vrot.slane %v683_v26, 4  ;;  %v674_v29 = vpop.f32.mrb[11].mxu0 }
 0x570   :  { %v678_v30 = vadd.f32 %v677_v25, %v676_v22 }
 0x571   :  { %v685_v31 = vadd.f32 %v684_v28, %v683_v26 }
 0x572   :  { %v679_v32 = vrot.slane %v678_v30, 2 }
 0x573   :  { %v686_v33 = vrot.slane %v685_v31, 2 }
 0x574   :  { %v680_v34 = vadd.f32 %v679_v32, %v678_v30 }
 0x575   :  { %v687_v35 = vadd.f32 %v686_v33, %v685_v31 }
 0x576   :  { %v681_v36 = vrot.slane %v680_v34, 1 }
 0x577   :  { %v688_v37 = vrot.slane %v687_v35, 1 }
 0x578   :  { %v682_v38 = vadd.f32 %v681_v36, %v680_v34 }
 0x579   :  { %v689_v39 = vadd.f32 %v688_v37, %v687_v35 }
 0x57a   :  { %v690_v40 = vmul.f32 0.5, %v682_v38 }
 0x57b   :  { %v691_v41 = vmul.f32 0.5, %v689_v39 }
 0x57c   :  { %v692_v58 = vsub.f32 %v669_v19, %v690_v40 }
 0x57d   :  { %v693_v57 = vsub.f32 %v671_v24, %v691_v41 }
 0x57e   :  { %v694_v59 = vmul.f32 %v692_v58, %v692_v58 }
 0x57f   :  { %v695_v53 = vmul.f32 %v693_v57, %v693_v57 }
 0x580   :  { %v696_v43 = vsel %vm293_vm0, %v694_v59, 0.0 }
 0x581   :  { %v697_v45 = vrot.slane %v696_v43, 4  ;;  %v703_v0 = vsel %vm293_vm0, %v695_v53, 0.0 }
 0x582   :  { %v704_v12 = vrot.slane %v703_v0, 4 }
 0x583   :  { %v698_v63 = vadd.f32 %v697_v45, %v696_v43 }
 0x584   :  { %v705_v7 = vadd.f32 %v704_v12, %v703_v0 }
 0x585   :  { %v699_v54 = vrot.slane %v698_v63, 2 }
 0x586   :  { %v706_v55 = vrot.slane %v705_v7, 2 }
 0x587   :  { %v700_v56 = vadd.f32 %v699_v54, %v698_v63 }
 0x588   :  { %v707_v61 = vadd.f32 %v706_v55, %v705_v7 }
 0x589   :  { %v701_v62 = vrot.slane %v700_v56, 1 }
 0x58a   :  { %v708_v8 = vrot.slane %v707_v61, 1 }
 0x58b   :  { %v702_v44 = vadd.f32 %v701_v62, %v700_v56 }
 0x58c   :  { %v709_v18 = vadd.f32 %v708_v8, %v707_v61 }
 0x58d   :  { %v710_v23 = vmul.f32 0.5, %v702_v44 }
 0x58e   :  { %v711_v42 = vmul.f32 0.5, %v709_v18 }
 0x58f   :  { %v712_v48 = vadd.f32 1e-05, %v710_v23 }
 0x590   :  { %v713_v49 = vadd.f32 1e-05, %v711_v42 }
 0x591   :  { %919 = vrsqrt.f32 %v712_v48 }
 0x592   :  { %921 = vrsqrt.f32 %v713_v49 }
 0x59b   :  { %v920_v50 = vpop.eup %919 }
 0x59c   :  { %v922_v13 = vpop.eup %921 }
 0x59d   :  { %v718_v51 = vcombine.low %v920_v50, %v922_v13 }
 0x59f   :  { %v725_v52 = vrot.slane %v718_v51, %v1240_v60 }
 0x5a1   :  { %v732_v1 = vrot.slane %v725_v52, %v1240_v60 }
 0x5a3   :  { %v734_v2 = vmul.f32 %v732_v1, %v1246_v9 }
 0x5a5   :  { %v739_v3 = vrot.slane %v734_v2, %v1250_v20  ;;  %v743_v4 = vrot.slane %v734_v2, %v1253_v21 }
 0x5a7   :  { %v747_v5 = vmul.f32 %v743_v4, %v693_v57  ;;  %v746_v6 = vmul.f32 %v739_v3, %v692_v58 }
 0x5a9   :  { %v749_v11 = vadd.f32 %v747_v5, %v1264_v47  ;;  %v748_v14 = vadd.f32 %v746_v6, %v1261_v46 }
 0x5ab   :  { %v751_v15 = vmax.f32 %v749_v11, 0.0  ;;  %v750_v17 = vmax.f32 %v748_v14, 0.0 }
 0x5ad   :  { %v753_v19 = vpack.c.bf16 %v751_v15, %v751_v15  ;;  %v752_v22 = vpack.c.bf16 %v750_v17, %v750_v17 }
 0x5af   :  { %786 = vmatprep.mubr.bf16.mxu1 %v753_v19 }
 0x5b0   :  { %787 = vmatmul.mubr.bf16.vlgmr.msra.gmra.mrb[8].mxu1 %v752_v22 }
 0x683   :  { %v788_v24 = vpop.f32.mrb[8].mxu1 }
 0x684   :  { %v790_v60 = vpop.f32.mrb[9].mxu1 }
 0x685   :  { %v797_v25 = vcombine.low %v788_v24, %v790_v60  ;;  %v792_v9 = vpop.f32.mrb[10].mxu1 }
 0x686   :  { %v793_v26 = vpop.f32.mrb[11].mxu1 }
 0x687   :  { %v804_v20 = vrot.slane %v797_v25, %v1097_v16 }
 0x689   :  { %v806_v21 = vsub.f32 %v1382_v10, %v804_v20 }
 0x68b   :  { %807 = vst [vmem:[#allocation7] sm:$0xf] %v806_v21 }
 0x68c   :  { %978 = shalt.err (!%p975_p6)
}
 0x68d   :  { %s979_s20 = scalar_lea.hbm %s1415_s4, 64 }
 0x68e   :  { %p980_p7 = scmp.ne.s32.totalorder %s1415_s4, %s979_s20  ;;  %p983_p8 = scmp.lt.u32.totalorder %s979_s20, %s1415_s4 }
 0x690   :  { %p985_p9 = pnand %p983_p8, %p980_p7 }
 0x692   :  { %988 = shalt.err (!%p985_p9)
}
 0x693   :  { %817 = dma.vmem_to_hbm [thread:$0]  %s815_s3, 64, %s1415_s4, [#allocation4]  }
 0x694   :  { %993 = dma.done.wait [#allocation4], 64  }
 0x695   :  { %994 = vsyncadd [#allocation4], 4294967232 }
 0x696   :  { %821 = vsyncpa [#allocation3], 1 }
 0x697   :  { %822 = vsyncpa [#allocation6], 1 }
 0x698   :  { %823 = vsyncpa [#allocation4], 1 }

</bundles_post_ra>
